<compile_context>
chip_gen: v5e
topology: v5e:2x2
jax: 0.10.0
libtpu: 0.0.40
codegen_flags: <defaults>
</compile_context>

<pallas_src>
import jax
import jax.numpy as jnp
from jax.experimental import pallas as pl
from jax.experimental.pallas import tpu as pltpu


def _linreg_kernel(w_ref, b_ref, x_ref, o_ref):
    # w_ref, b_ref are (1, 1) scalars in SMEM; x_ref / o_ref are VMEM tiles.
    w = w_ref[0, 0]
    b = b_ref[0, 0]
    o_ref[...] = w * x_ref[...] + b


def _round_up(n: int, m: int) -> int:
    return ((n + m - 1) // m) * m


def linear_regression_forward(x: jax.Array, weights: jax.Array, bias: jax.Array) -> jax.Array:
    """y = weights * x + bias, with scalar weights/bias (shape (1,) like nn.Parameter)."""
    orig_shape = x.shape
    orig_dtype = x.dtype

    # Flatten to a lane-dense slab; the op is elementwise so layout is free.
    xf = x.reshape(-1).astype(jnp.float32)
    total = xf.shape[0]

    LANE, SUBLANE = 128, 8
    MAX_TN = 2048   # lane dim per tile (multiple of 128)
    MAX_TM = 512    # sublane dim per tile (multiple of 8) -> 4 MiB f32 tiles max

    # Lane-dense width: a big multiple of 128, but no wider than needed.
    TN = min(MAX_TN, _round_up(max(total, 1), LANE))
    rows = _round_up(total, TN) // TN
    # Row block: up to 512, multiple of 8 (or covering all rows).
    TM = min(MAX_TM, _round_up(rows, SUBLANE))
    padded_rows = _round_up(rows, TM)
    padded_len = padded_rows * TN

    if padded_len != total:
        xf = jnp.pad(xf, (0, padded_len - total))
    x2 = xf.reshape(padded_rows, TN)

    w2 = weights.reshape(1, 1).astype(jnp.float32)
    b2 = bias.reshape(1, 1).astype(jnp.float32)

    grid = (padded_rows // TM,)

    out2 = pl.pallas_call(
        _linreg_kernel,
        out_shape=jax.ShapeDtypeStruct((padded_rows, TN), jnp.float32),
        grid_spec=pl.GridSpec(
            grid=grid,
            in_specs=[
                pl.BlockSpec(memory_space=pltpu.SMEM),        # weights scalar
                pl.BlockSpec(memory_space=pltpu.SMEM),        # bias scalar
                pl.BlockSpec((TM, TN), lambda i: (i, 0)),     # x tile (lane-dense)
            ],
            out_specs=pl.BlockSpec((TM, TN), lambda i: (i, 0)),
        ),
        compiler_params=pltpu.CompilerParams(
            dimension_semantics=("parallel",),
            vmem_limit_bytes=48 * 1024 * 1024,   # room for 4 MiB tiles, double-buffered in+out
        ),
        cost_estimate=pl.CostEstimate(
            flops=2 * total,
            transcendentals=0,
            bytes_accessed=2 * padded_len * 4,   # read x + write y (f32)
        ),
    )(w2, b2, x2)

    return out2.reshape(-1)[:total].reshape(orig_shape).astype(orig_dtype)


if __name__ == "__main__":
    key = jax.random.PRNGKey(0)
    kw, kb, kx, kx2 = jax.random.split(key, 4)

    # Deterministic "parameters" matching nn.Parameter(torch.randn(1)) shapes.
    weights = jax.random.normal(kw, (1,), dtype=jnp.float32)
    bias = jax.random.normal(kb, (1,), dtype=jnp.float32)

    # Small inputs consistent with the forward (pure elementwise affine).
    x = jax.random.normal(kx, (8, 32), dtype=jnp.float32)
    y = jax.block_until_ready(linear_regression_forward(x, weights, bias))
    y_ref = weights[0] * x + bias[0]
    assert jnp.allclose(y, y_ref, atol=1e-6, rtol=1e-6)

    # Ragged shape (not a multiple of 128) to exercise the padding/reshape path.
    x2 = jax.random.normal(kx2, (5, 300), dtype=jnp.float32)
    y2 = jax.block_until_ready(linear_regression_forward(x2, weights, bias))
    y2_ref = weights[0] * x2 + bias[0]
    assert jnp.allclose(y2, y2_ref, atol=1e-6, rtol=1e-6)

    print("KERNEL_OK")
</pallas_src>

<mosaic_0001>
module attributes {stable_mosaic.version = 11 : i64} {
  func.func @_linreg_kernel(%arg0: i32, %arg1: memref<1x1xf32, #tpu.memory_space<smem>>, %arg2: memref<1x1xf32, #tpu.memory_space<smem>>, %arg3: memref<8x256xf32, #tpu.memory_space<vmem>>, %arg4: memref<8x256xf32, #tpu.memory_space<vmem>>) attributes {dimension_semantics = [#tpu.dimension_semantics<parallel>], iteration_bounds = array<i64: 1>, scalar_prefetch = 0 : i64, scratch_operands = 0 : i64, tpu.core_type = #tpu.core_type<tc>, window_params = [{transform_indices = @transform_0, window_bounds = array<i64: 1, 1>}, {transform_indices = @transform_1, window_bounds = array<i64: 1, 1>}, {transform_indices = @transform_2, window_bounds = array<i64: 8, 256>}, {transform_indices = @transform_3, window_bounds = array<i64: 8, 256>}]} {
    %c0 = arith.constant 0 : index
    %c0_0 = arith.constant 0 : index
    %0 = memref.load %arg1[%c0, %c0_0] : memref<1x1xf32, #tpu.memory_space<smem>>
    %c0_1 = arith.constant 0 : index
    %c0_2 = arith.constant 0 : index
    %1 = memref.load %arg2[%c0_1, %c0_2] : memref<1x1xf32, #tpu.memory_space<smem>>
    %c0_3 = arith.constant 0 : index
    %c0_4 = arith.constant 0 : index
    %2 = vector.load %arg3[%c0_3, %c0_4] : memref<8x256xf32, #tpu.memory_space<vmem>>, vector<8x256xf32>
    %3 = vector.broadcast %0 : f32 to vector<8x256xf32>
    %4 = arith.mulf %3, %2 : vector<8x256xf32>
    %5 = vector.broadcast %1 : f32 to vector<8x256xf32>
    %6 = arith.addf %4, %5 : vector<8x256xf32>
    %c0_5 = arith.constant 0 : index
    %c0_6 = arith.constant 0 : index
    %7 = vector.load %arg4[%c0_5, %c0_6] : memref<8x256xf32, #tpu.memory_space<vmem>>, vector<8x256xf32>
    tpu.vector_store %arg4[%c0_5, %c0_6], %6 {strides = array<i32>} : memref<8x256xf32, #tpu.memory_space<vmem>>, vector<8x256xf32>,
    return
  }
  func.func @transform_0(%arg0: i32) -> (i32, i32) {
    %c0_i32 = arith.constant 0 : i32
    %c0_i32_0 = arith.constant 0 : i32
    %c0_i32_1 = arith.constant 0 : i32
    return %c0_i32, %c0_i32_0 : i32, i32
  }
  func.func @transform_1(%arg0: i32) -> (i32, i32) {
    %c0_i32 = arith.constant 0 : i32
    %c0_i32_0 = arith.constant 0 : i32
    %c0_i32_1 = arith.constant 0 : i32
    return %c0_i32, %c0_i32_0 : i32, i32
  }
  func.func @transform_2(%arg0: i32) -> (i32, i32) {
    %c0_i32 = arith.constant 0 : i32
    %c0_i32_0 = arith.constant 0 : i32
    return %arg0, %c0_i32 : i32, i32
  }
  func.func @transform_3(%arg0: i32) -> (i32, i32) {
    %c0_i32 = arith.constant 0 : i32
    %c0_i32_0 = arith.constant 0 : i32
    return %arg0, %c0_i32 : i32, i32
  }
}

</mosaic_0001>

<bundles_post_ra>
// kernel: tpu_custom_call.1
= control target key start
LH: loop header
LB: loop body
LE: loop exit
PB: predicated region body
PF: predicated region fallthrough
CT: control target
= control target key end

     0   :  { %10 = vsyncpa [#allocation5], 0  ;;  %s148_s0 = inlined_call_operand.<no memory space> [shape: f32[1,1], index: 0, kind: input, shape index: {}]   ;;  %s149_s1 = inlined_call_operand.<no memory space> [shape: f32[1,1], index: 1, kind: input, shape index: {}]   ;;  %s150_s2 = inlined_call_operand.hbm [shape: f32[8,256], index: 2, kind: input, shape index: {}]   ;;  %s151_s3 = inlined_call_operand.hbm [shape: f32[8,256], index: 3, kind: output, shape index: {}]  }
   0x1   :  { %11 = vsyncpa [#allocation6], 0  ;;  %s21_s14 = sshll.u32 %s150_s2, 4  ;;  %s114_s15 = smov [#allocation4]   ;;  %s22_s14 = int_to_ptr.hbm [resolvable:$true] %s21_s14 }
   0x2   :  { %s23_s16 = sshll.u32 %s114_s15, 4  ;;  %s24_s16 = int_to_ptr.vmem [resolvable:$true] %s23_s16 }
   0x3   :  { %26 = dma.hbm_to_vmem [thread:$0]  %s22_s14, 256, %s24_s16, [#allocation5]  }
   0x4   :  { %110 = dma.done.wait [#allocation5], 256  }
   0x5   :  { %111 = vsyncadd [#allocation5], 4294967040  ;;  %v35_v0 = vstv %s148_s0  ;;  %v33_v1 = vld [vmem:[#allocation4] sm:$0xff]  ;;  %v38_v2 = vstv %s149_s1  ;;  %v34_v3 = vld [vmem:[#allocation4 + $0x8] sm:$0xff]  ;;  %s115_s2 = smov [#allocation7]   ;;  %s50_s24 = sshll.u32 %s151_s3, 4  ;;  %s51_s24 = int_to_ptr.hbm [resolvable:$true] %s50_s24 }
   0x6   :  { %v36_v4 = vmul.f32 %v35_v0, %v33_v1  ;;  %v37_v5 = vmul.f32 %v35_v0, %v34_v3  ;;  %s48_s21 = sshll.u32 %s115_s2, 4  ;;  %s49_s21 = int_to_ptr.vmem [resolvable:$true] %s48_s21 }
   0x8   :  { %v39_v6 = vadd.f32 %v38_v2, %v36_v4  ;;  %v40_v7 = vadd.f32 %v38_v2, %v37_v5 }
   0xa   :  { %41 = vst [vmem:[#allocation7] sm:$0xff] %v39_v6 }
   0xb   :  { %42 = vst [vmem:[#allocation7 + $0x8] sm:$0xff] %v40_v7 }
   0xc   :  { %53 = dma.vmem_to_hbm [thread:$0]  %s49_s21, 256, %s51_s24, [#allocation6]  }
   0xd   :  { %112 = dma.done.wait [#allocation6], 256  }
   0xe   :  { %113 = vsyncadd [#allocation6], 4294967040 }
   0xf   :  { %58 = vsyncpa [#allocation5], 1 }
  0x10   :  { %59 = vsyncpa [#allocation6], 1 }

</bundles_post_ra>
